<compile_context>
chip_gen: v7x
topology: tpu7x:2x2x1
jax: 0.10.0
libtpu: 0.0.40
codegen_flags: <defaults>
</compile_context>

<pallas_src>
import functools

import jax
import jax.numpy as jnp
from jax.experimental import pallas as pl
from jax.experimental.pallas import tpu as pltpu

EPS = 1e-5                       # torch.nn.LayerNorm default
_SQRT_HALF = 0.7071067811865476  # 1/sqrt(2) for exact (erf) GELU


# --------------------------- in-kernel helpers -------------------------------

def _ln(x, g, b):
    """LayerNorm over last dim. x: (R, D) f32, g/b: (1, D)."""
    mu = jnp.mean(x, axis=-1, keepdims=True)
    var = jnp.mean((x - mu) ** 2, axis=-1, keepdims=True)
    return (x - mu) * jax.lax.rsqrt(var + EPS) * g + b


def _gelu_exact(x):
    return 0.5 * x * (1.0 + jax.lax.erf(x * _SQRT_HALF))


def _softmax_last(s):
    m = jnp.max(s, axis=-1, keepdims=True)
    p = jnp.exp(s - m)
    return p * pl.reciprocal(jnp.sum(p, axis=-1, keepdims=True), approx=True)


def _attention(q, k, v, wo, heads, dim_head):
    """Multi-head attention + output projection.

    q:   (N, inner) with dh**-0.5 already folded into the projection
    k/v: (M, inner), wo: (inner, Dout).  Returns (N, Dout) f32.
    heads > 1 uses a lane-dense block-diagonal formulation: one matmul for all
    heads' scores and one for PV (no per-head 16-lane slicing).
    """
    n, inner = q.shape
    m = k.shape[0]
    if heads == 1:
        s = jax.lax.dot_general(q, k, (((1,), (1,)), ((), ())),
                                preferred_element_type=jnp.float32)   # (N, M)
        p = _softmax_last(s)
        o = jnp.dot(p, v, preferred_element_type=jnp.float32)         # (N, dh)
    else:
        hm = heads * m
        row = jax.lax.broadcasted_iota(jnp.int32, (hm, inner), 0) // m
        col = jax.lax.broadcasted_iota(jnp.int32, (hm, inner), 1) // dim_head
        blk = row == col                                               # block-diag mask
        k_rep = jnp.concatenate([k] * heads, axis=0)                   # (H*M, inner)
        v_rep = jnp.concatenate([v] * heads, axis=0)
        k_bd = jnp.where(blk, k_rep, 0.0)
        v_bd = jnp.where(blk, v_rep, 0.0)
        # scores for all heads in one matmul: S[:, h*M:(h+1)*M] = q_h @ k_h^T
        s = jax.lax.dot_general(q, k_bd, (((1,), (1,)), ((), ())),
                                preferred_element_type=jnp.float32)    # (N, H*M)
        p = _softmax_last(s.reshape(n, heads, m)).reshape(n, hm)
        # PV for all heads in one matmul: O[:, h*dh:(h+1)*dh] = p_h @ v_h
        o = jnp.dot(p, v_bd, preferred_element_type=jnp.float32)       # (N, inner)
    return jnp.dot(o, wo, preferred_element_type=jnp.float32)


def _geglu_ff(x, g, b, w1, b1, w2, b2):
    """LN -> Linear -> GEGLU -> Linear (PyTorch FeedForward)."""
    xn = _ln(x, g, b)
    y = jnp.dot(xn, w1, preferred_element_type=jnp.float32) + b1
    h = y.shape[-1] // 2
    return jnp.dot(y[:, :h] * _gelu_exact(y[:, h:]), w2,
                   preferred_element_type=jnp.float32) + b2


# --------------------------- fused Pallas kernels ----------------------------

def _encoder_kernel(lat_ref, data_ref,
                    gx_ref, bx_ref, gc_ref, bc_ref,
                    wq_ref, wkv_ref, wo_ref, bo_ref,
                    gf_ref, bf_ref, w1_ref, b1_ref, w2_ref, b2_ref,
                    o_ref, *, heads, dim_head):
    """cross-attn(latents, data) + residual, then cross-FF + residual."""
    inner = heads * dim_head
    x0 = lat_ref[...].astype(jnp.float32)                  # (N, D) shared latents
    ctx = data_ref[0].astype(jnp.float32)                  # (M, Dc)

    xn = _ln(x0, gx_ref[...], bx_ref[...])
    cn = _ln(ctx, gc_ref[...], bc_ref[...])
    q = jnp.dot(xn, wq_ref[...], preferred_element_type=jnp.float32)   # scale folded
    kv = jnp.dot(cn, wkv_ref[...], preferred_element_type=jnp.float32)
    attn = _attention(q, kv[:, :inner], kv[:, inner:], wo_ref[...],
                      heads, dim_head) + bo_ref[...]
    x = x0 + attn
    x = x + _geglu_ff(x, gf_ref[...], bf_ref[...], w1_ref[...], b1_ref[...],
                      w2_ref[...], b2_ref[...])
    o_ref[0] = x.astype(o_ref.dtype)


def _trunk_kernel(x_ref,
                  g1_ref, b1_ref, wqkv_ref, wo_ref, bo_ref,
                  g2_ref, b2_ref, w1_ref, bf1_ref, w2_ref, bf2_ref,
                  o_ref, *, heads, dim_head):
    """One latent layer (self-attn + FF); x lives in o_ref across the depth axis."""
    @pl.when(pl.program_id(1) == 0)
    def _():
        o_ref[...] = x_ref[...]

    inner = heads * dim_head
    x = o_ref[0].astype(jnp.float32)                        # (N, D)

    xn = _ln(x, g1_ref[0], b1_ref[0])
    qkv = jnp.dot(xn, wqkv_ref[0], preferred_element_type=jnp.float32)  # Q pre-scaled
    attn = _attention(qkv[:, :inner], qkv[:, inner:2 * inner], qkv[:, 2 * inner:],
                      wo_ref[0], heads, dim_head) + bo_ref[0]
    x = x + attn
    x = x + _geglu_ff(x, g2_ref[0], b2_ref[0], w1_ref[0], bf1_ref[0],
                      w2_ref[0], bf2_ref[0])
    o_ref[0] = x.astype(o_ref.dtype)


def _make_decoder_kernel(heads, dim_head, has_ff):
    inner = heads * dim_head

    def kernel(q_ref, x_ref, gq_ref, bq_ref, gc_ref, bc_ref,
               wq_ref, wkv_ref, wo_ref, bo_ref, *rest):
        if has_ff:
            (gf_ref, bf_ref, w1_ref, b1_ref, w2_ref, b2_ref,
             wl_ref, bl_ref, o_ref) = rest
        else:
            wl_ref, bl_ref, o_ref = rest

        qx = q_ref[0].astype(jnp.float32)                   # (Nq, Dq)
        ctx = x_ref[0].astype(jnp.float32)                  # (Nl, Dl)
        qn = _ln(qx, gq_ref[...], bq_ref[...])
        cn = _ln(ctx, gc_ref[...], bc_ref[...])
        q = jnp.dot(qn, wq_ref[...], preferred_element_type=jnp.float32)
        kv = jnp.dot(cn, wkv_ref[...], preferred_element_type=jnp.float32)
        lat = _attention(q, kv[:, :inner], kv[:, inner:], wo_ref[...],
                         heads, dim_head) + bo_ref[...]     # no residual
        if has_ff:
            lat = lat + _geglu_ff(lat, gf_ref[...], bf_ref[...], w1_ref[...],
                                  b1_ref[...], w2_ref[...], b2_ref[...])
        logits = jnp.dot(lat, wl_ref[...],
                         preferred_element_type=jnp.float32) + bl_ref[...]
        o_ref[0] = logits.astype(o_ref.dtype)               # lane-dense (padded) store

    return kernel


# --------------------------- pallas_call wrappers ----------------------------

def _const(shape):
    """BlockSpec covering the full array with a constant (0,...) index."""
    return pl.BlockSpec(shape, lambda *args: (0,) * len(shape))
    # NOTE: weights never change across grid steps; default double-buffering is
    # harmless at these sizes (pl.Buffered(1) could shave VMEM for big models).


def pallas_encoder(latents, data, p):
    N, D = latents.shape
    B, M, Dc = data.shape
    heads, dh = p['heads'], p['dim_head']
    inner = heads * dh
    H2 = p['ff_w1'].shape[1]
    kernel = functools.partial(_encoder_kernel, heads=heads, dim_head=dh)
    return pl.pallas_call(
        kernel,
        grid=(B,),
        in_specs=[
            _const((N, D)),
            pl.BlockSpec((1, M, Dc), lambda b: (b, 0, 0)),
            _const((1, D)), _const((1, D)),
            _const((1, Dc)), _const((1, Dc)),
            _const((D, inner)), _const((Dc, 2 * inner)),
            _const((inner, D)), _const((1, D)),
            _const((1, D)), _const((1, D)),
            _const((D, H2)), _const((1, H2)),
            _const((H2 // 2, D)), _const((1, D)),
        ],
        out_specs=pl.BlockSpec((1, N, D), lambda b: (b, 0, 0)),
        out_shape=jax.ShapeDtypeStruct((B, N, D), jnp.float32),
        compiler_params=pltpu.CompilerParams(dimension_semantics=("parallel",)),
    )(latents, data,
      p['ln_q_g'], p['ln_q_b'], p['ln_ctx_g'], p['ln_ctx_b'],
      p['wq'], p['wkv'], p['wo'], p['bo'],
      p['ff_g'], p['ff_b'], p['ff_w1'], p['ff_b1'], p['ff_w2'], p['ff_b2'])


def pallas_trunk(x, p):
    B, N, D = x.shape
    depth = p['wqkv'].shape[0]
    heads, dh = p['heads'], p['dim_head']
    inner = heads * dh
    H2 = p['ff_w1'].shape[2]

    def wspec(shape):
        return pl.BlockSpec((1,) + shape, lambda b, l: (l,) + (0,) * len(shape))

    kernel = functools.partial(_trunk_kernel, heads=heads, dim_head=dh)
    return pl.pallas_call(
        kernel,
        grid=(B, depth),
        in_specs=[
            pl.BlockSpec((1, N, D), lambda b, l: (b, 0, 0)),   # fetched once per b
            wspec((1, D)), wspec((1, D)),
            wspec((D, 3 * inner)), wspec((inner, D)), wspec((1, D)),
            wspec((1, D)), wspec((1, D)),
            wspec((D, H2)), wspec((1, H2)),
            wspec((H2 // 2, D)), wspec((1, D)),
        ],
        out_specs=pl.BlockSpec((1, N, D), lambda b, l: (b, 0, 0)),  # resident over l
        out_shape=jax.ShapeDtypeStruct((B, N, D), jnp.float32),
        compiler_params=pltpu.CompilerParams(
            dimension_semantics=("parallel", "arbitrary")),
    )(x,
      p['ln1_g'], p['ln1_b'], p['wqkv'], p['wo'], p['bo'],
      p['ln2_g'], p['ln2_b'], p['ff_w1'], p['ff_b1'], p['ff_w2'], p['ff_b2'])


def pallas_decoder(queries, x, p):
    B, Nq, Dq = queries.shape
    _, Nl, Dl = x.shape
    heads, dh = p['heads'], p['dim_head']
    inner = heads * dh
    has_ff = 'ff_w1' in p
    Lpad = p['w_logits'].shape[1]

    in_specs = [
        pl.BlockSpec((1, Nq, Dq), lambda b: (b, 0, 0)),
        pl.BlockSpec((1, Nl, Dl), lambda b: (b, 0, 0)),
        _const((1, Dq)), _const((1, Dq)),
        _const((1, Dl)), _const((1, Dl)),
        _const((Dq, inner)), _const((Dl, 2 * inner)),
        _const((inner, Dq)), _const((1, Dq)),
    ]
    args = [queries, x,
            p['ln_q_g'], p['ln_q_b'], p['ln_ctx_g'], p['ln_ctx_b'],
            p['wq'], p['wkv'], p['wo'], p['bo']]
    if has_ff:
        H2 = p['ff_w1'].shape[1]
        in_specs += [_const((1, Dq)), _const((1, Dq)),
                     _const((Dq, H2)), _const((1, H2)),
                     _const((H2 // 2, Dq)), _const((1, Dq))]
        args += [p['ff_g'], p['ff_b'], p['ff_w1'], p['ff_b1'],
                 p['ff_w2'], p['ff_b2']]
    in_specs += [_const((Dq, Lpad)), _const((1, Lpad))]
    args += [p['w_logits'], p['b_logits']]

    kernel = _make_decoder_kernel(heads, dh, has_ff)
    return pl.pallas_call(
        kernel,
        grid=(B,),
        in_specs=in_specs,
        out_specs=pl.BlockSpec((1, Nq, Lpad), lambda b: (b, 0, 0)),
        out_shape=jax.ShapeDtypeStruct((B, Nq, Lpad), jnp.float32),
        compiler_params=pltpu.CompilerParams(dimension_semantics=("parallel",)),
    )(*args)


# --------------------------- one-time param packing --------------------------

def pack_params(params):
    """Repack raw (PyTorch-style) params into kernel layout (done ONCE):
       scale folded into Q proj, wq|wkv fused, trunk stacked along depth,
       to_logits padded to a lane-dense multiple of 128."""

    def row(v):
        return v.reshape(1, -1)

    def cross(block):
        a = block['attn']
        dh = a['dim_head']
        return dict(
            heads=a['heads'], dim_head=dh,
            ln_q_g=row(block['norm']['g']), ln_q_b=row(block['norm']['b']),
            ln_ctx_g=row(block['norm_ctx']['g']),
            ln_ctx_b=row(block['norm_ctx']['b']),
            wq=a['wq'] * dh ** -0.5, wkv=a['wkv'],
            wo=a['wo'], bo=row(a['bo']))

    def ffpack(block):
        f = block['ff']
        return dict(ff_g=row(block['norm']['g']), ff_b=row(block['norm']['b']),
                    ff_w1=f['w1'], ff_b1=row(f['b1']),
                    ff_w2=f['w2'], ff_b2=row(f['b2']))

    kp = dict(latents=params['latents'])

    enc = cross(params['cross_attn'])
    enc.update(ffpack(params['cross_ff']))
    kp['encoder'] = enc

    layers = params['layers']
    if layers:
        a0 = layers[0]['attn']['attn']
        dh = a0['dim_head']

        def stack(fn):
            return jnp.stack([fn(l) for l in layers], axis=0)

        kp['trunk'] = dict(
            heads=a0['heads'], dim_head=dh,
            ln1_g=stack(lambda l: row(l['attn']['norm']['g'])),
            ln1_b=stack(lambda l: row(l['attn']['norm']['b'])),
            wqkv=stack(lambda l: jnp.concatenate(
                [l['attn']['attn']['wq'] * dh ** -0.5,
                 l['attn']['attn']['wkv']], axis=1)),
            wo=stack(lambda l: l['attn']['attn']['wo']),
            bo=stack(lambda l: row(l['attn']['attn']['bo'])),
            ln2_g=stack(lambda l: row(l['ff']['norm']['g'])),
            ln2_b=stack(lambda l: row(l['ff']['norm']['b'])),
            ff_w1=stack(lambda l: l['ff']['ff']['w1']),
            ff_b1=stack(lambda l: row(l['ff']['ff']['b1'])),
            ff_w2=stack(lambda l: l['ff']['ff']['w2']),
            ff_b2=stack(lambda l: row(l['ff']['ff']['b2'])))
    else:
        kp['trunk'] = None

    dec = cross(params['dec_cross_attn'])
    if params.get('dec_ff') is not None:
        dec.update(ffpack(params['dec_ff']))
    w, b = params['to_logits']['w'], params['to_logits']['b']
    logits_dim = w.shape[1]
    lpad = -(-logits_dim // 128) * 128
    dec['w_logits'] = jnp.pad(w, ((0, 0), (0, lpad - logits_dim)))
    dec['b_logits'] = jnp.pad(row(b), ((0, 0), (0, lpad - logits_dim)))
    dec['logits_dim'] = logits_dim
    kp['decoder'] = dec
    return kp


# --------------------------- Pallas forward (3 calls) ------------------------

def pallas_forward(kparams, data, queries, mask=None):
    # TODO(synk): attention key-padding mask not implemented (example uses None).
    assert mask is None
    x = pallas_encoder(kparams['latents'], data, kparams['encoder'])
    if kparams['trunk'] is not None:
        x = pallas_trunk(x, kparams['trunk'])
    if queries is None:
        return x
    if queries.ndim == 2:
        queries = jnp.broadcast_to(queries[None],
                                   (data.shape[0],) + queries.shape)
    dec = kparams['decoder']
    out = pallas_decoder(queries, x, dec)
    return out[..., :dec['logits_dim']]


# --------------------------- pure-JAX reference -------------------------------

def _ref_ln(x, p):
    mu = jnp.mean(x, axis=-1, keepdims=True)
    var = jnp.mean((x - mu) ** 2, axis=-1, keepdims=True)
    return (x - mu) * jax.lax.rsqrt(var + EPS) * p['g'] + p['b']


def _ref_attn(xn, cn, a):
    heads, dh = a['heads'], a['dim_head']
    inner = heads * dh
    b, n, _ = xn.shape
    m = cn.shape[1]
    q = xn @ a['wq']
    kv = cn @ a['wkv']
    k, v = kv[..., :inner], kv[..., inner:]

    def sp(t, s):
        return t.reshape(b, s, heads, dh).transpose(0, 2, 1, 3)

    s = jnp.einsum('bhid,bhjd->bhij', sp(q, n), sp(k, m)) * dh ** -0.5
    p = jax.nn.softmax(s, axis=-1)
    o = jnp.einsum('bhij,bhjd->bhid', p, sp(v, m))
    o = o.transpose(0, 2, 1, 3).reshape(b, n, inner)
    return o @ a['wo'] + a['bo']


def _ref_ff(x, blk):
    xn = _ref_ln(x, blk['norm'])
    f = blk['ff']
    y = xn @ f['w1'] + f['b1']
    a, g = jnp.split(y, 2, axis=-1)
    return (a * jax.nn.gelu(g, approximate=False)) @ f['w2'] + f['b2']


def ref_forward(params, data, queries, mask=None):
    assert mask is None
    b = data.shape[0]
    x = jnp.broadcast_to(params['latents'][None], (b,) + params['latents'].shape)
    ca = params['cross_attn']
    x = _ref_attn(_ref_ln(x, ca['norm']), _ref_ln(data, ca['norm_ctx']),
                  ca['attn']) + x
    x = _ref_ff(x, params['cross_ff']) + x
    for layer in params['layers']:
        sa = layer['attn']
        xn = _ref_ln(x, sa['norm'])
        x = _ref_attn(xn, xn, sa['attn']) + x
        x = _ref_ff(x, layer['ff']) + x
    if queries is None:
        return x
    if queries.ndim == 2:
        queries = jnp.broadcast_to(queries[None], (b,) + queries.shape)
    dca = params['dec_cross_attn']
    lat = _ref_attn(_ref_ln(queries, dca['norm']),
                    _ref_ln(x, dca['norm_ctx']), dca['attn'])
    if params.get('dec_ff') is not None:
        lat = lat + _ref_ff(lat, params['dec_ff'])
    return lat @ params['to_logits']['w'] + params['to_logits']['b']


# --------------------------- deterministic params ----------------------------

def init_params(key, cfg):
    kit = iter(jax.random.split(key, 256))

    def nrm(*shape, scale=0.05):
        return scale * jax.random.normal(next(kit), shape, dtype=jnp.float32)

    def ln(d):
        return dict(g=jnp.ones((d,), jnp.float32), b=jnp.zeros((d,), jnp.float32))

    def attn_p(dq, dc, heads, dh):
        inner = heads * dh
        return dict(heads=heads, dim_head=dh,
                    wq=nrm(dq, inner), wkv=nrm(dc, 2 * inner),
                    wo=nrm(inner, dq), bo=nrm(dq))

    def ff_p(d, mult=4):
        return dict(w1=nrm(d, d * mult * 2), b1=nrm(d * mult * 2),
                    w2=nrm(d * mult, d), b2=nrm(d))

    return dict(
        latents=nrm(cfg['num_latents'], cfg['latent_dim'], scale=1.0),
        cross_attn=dict(norm=ln(cfg['latent_dim']), norm_ctx=ln(cfg['dim']),
                        attn=attn_p(cfg['latent_dim'], cfg['dim'],
                                    cfg['cross_heads'], cfg['cross_dim_head'])),
        cross_ff=dict(norm=ln(cfg['latent_dim']), ff=ff_p(cfg['latent_dim'])),
        layers=[dict(attn=dict(norm=ln(cfg['latent_dim']),
                               attn=attn_p(cfg['latent_dim'], cfg['latent_dim'],
                                           cfg['latent_heads'],
                                           cfg['latent_dim_head'])),
                     ff=dict(norm=ln(cfg['latent_dim']), ff=ff_p(cfg['latent_dim'])))
                for _ in range(cfg['depth'])],
        dec_cross_attn=dict(norm=ln(cfg['queries_dim']),
                            norm_ctx=ln(cfg['latent_dim']),
                            attn=attn_p(cfg['queries_dim'], cfg['latent_dim'],
                                        cfg['cross_heads'], cfg['cross_dim_head'])),
        dec_ff=(dict(norm=ln(cfg['queries_dim']), ff=ff_p(cfg['queries_dim']))
                if cfg['decoder_ff'] else None),
        to_logits=dict(w=nrm(cfg['queries_dim'], cfg['logits_dim']),
                       b=nrm(cfg['logits_dim'])),
    )


if __name__ == "__main__":
    cfg = dict(depth=2, dim=32, queries_dim=32, logits_dim=10,
               num_latents=16, latent_dim=64, cross_heads=1, latent_heads=4,
               cross_dim_head=16, latent_dim_head=16, decoder_ff=True)

    key = jax.random.PRNGKey(0)
    kparam, kdata, kquery = jax.random.split(key, 3)
    params = init_params(kparam, cfg)
    data = jax.random.normal(kdata, (2, 8, cfg['dim']), dtype=jnp.float32)
    queries = jax.random.normal(kquery, (2, 8, cfg['queries_dim']), dtype=jnp.float32)

    kparams = pack_params(params)   # one-time repack (not per forward call)

    out = jax.block_until_ready(pallas_forward(kparams, data, queries))
    ref = jax.block_until_ready(ref_forward(params, data, queries))

    assert out.shape == (2, 8, cfg['logits_dim'])
    err = float(jnp.max(jnp.abs(out - ref)))
    # tolerance 2e-3 to accommodate pl.reciprocal(approx=True) in the softmax
    assert jnp.allclose(out, ref, atol=2e-3, rtol=2e-3), err
    print("KERNEL_OK")
</pallas_src>

<mosaic_0001>
module attributes {stable_mosaic.version = 11 : i64} {
  func.func @_encoder_kernel(%arg0: i32, %arg1: memref<16x64xf32, #tpu.memory_space<vmem>>, %arg2: memref<1x8x32xf32, #tpu.memory_space<vmem>>, %arg3: memref<1x64xf32, #tpu.memory_space<vmem>>, %arg4: memref<1x64xf32, #tpu.memory_space<vmem>>, %arg5: memref<1x32xf32, #tpu.memory_space<vmem>>, %arg6: memref<1x32xf32, #tpu.memory_space<vmem>>, %arg7: memref<64x16xf32, #tpu.memory_space<vmem>>, %arg8: memref<32x32xf32, #tpu.memory_space<vmem>>, %arg9: memref<16x64xf32, #tpu.memory_space<vmem>>, %arg10: memref<1x64xf32, #tpu.memory_space<vmem>>, %arg11: memref<1x64xf32, #tpu.memory_space<vmem>>, %arg12: memref<1x64xf32, #tpu.memory_space<vmem>>, %arg13: memref<64x512xf32, #tpu.memory_space<vmem>>, %arg14: memref<1x512xf32, #tpu.memory_space<vmem>>, %arg15: memref<256x64xf32, #tpu.memory_space<vmem>>, %arg16: memref<1x64xf32, #tpu.memory_space<vmem>>, %arg17: memref<1x16x64xf32, #tpu.memory_space<vmem>>) attributes {dimension_semantics = [#tpu.dimension_semantics<parallel>], iteration_bounds = array<i64: 2>, scalar_prefetch = 0 : i64, scratch_operands = 0 : i64, tpu.core_type = #tpu.core_type<tc>, window_params = [{pipeline_mode = #tpu.pipeline_mode<synchronous>, transform_indices = @transform_0, window_bounds = array<i64: 16, 64>}, {transform_indices = @transform_1, window_bounds = array<i64: 1, 8, 32>}, {pipeline_mode = #tpu.pipeline_mode<synchronous>, transform_indices = @transform_2, window_bounds = array<i64: 1, 64>}, {pipeline_mode = #tpu.pipeline_mode<synchronous>, transform_indices = @transform_3, window_bounds = array<i64: 1, 64>}, {pipeline_mode = #tpu.pipeline_mode<synchronous>, transform_indices = @transform_4, window_bounds = array<i64: 1, 32>}, {pipeline_mode = #tpu.pipeline_mode<synchronous>, transform_indices = @transform_5, window_bounds = array<i64: 1, 32>}, {pipeline_mode = #tpu.pipeline_mode<synchronous>, transform_indices = @transform_6, window_bounds = array<i64: 64, 16>}, {pipeline_mode = #tpu.pipeline_mode<synchronous>, transform_indices = @transform_7, window_bounds = array<i64: 32, 32>}, {pipeline_mode = #tpu.pipeline_mode<synchronous>, transform_indices = @transform_8, window_bounds = array<i64: 16, 64>}, {pipeline_mode = #tpu.pipeline_mode<synchronous>, transform_indices = @transform_9, window_bounds = array<i64: 1, 64>}, {pipeline_mode = #tpu.pipeline_mode<synchronous>, transform_indices = @transform_10, window_bounds = array<i64: 1, 64>}, {pipeline_mode = #tpu.pipeline_mode<synchronous>, transform_indices = @transform_11, window_bounds = array<i64: 1, 64>}, {pipeline_mode = #tpu.pipeline_mode<synchronous>, transform_indices = @transform_12, window_bounds = array<i64: 64, 512>}, {pipeline_mode = #tpu.pipeline_mode<synchronous>, transform_indices = @transform_13, window_bounds = array<i64: 1, 512>}, {pipeline_mode = #tpu.pipeline_mode<synchronous>, transform_indices = @transform_14, window_bounds = array<i64: 256, 64>}, {pipeline_mode = #tpu.pipeline_mode<synchronous>, transform_indices = @transform_15, window_bounds = array<i64: 1, 64>}, {transform_indices = @transform_16, window_bounds = array<i64: 1, 16, 64>}]} {
    %c0 = arith.constant 0 : index
    %c0_0 = arith.constant 0 : index
    %0 = vector.load %arg1[%c0, %c0_0] : memref<16x64xf32, #tpu.memory_space<vmem>>, vector<16x64xf32>
    %c0_1 = arith.constant 0 : index
    %c0_2 = arith.constant 0 : index
    %c0_3 = arith.constant 0 : index
    %1 = vector.load %arg2[%c0_1, %c0_2, %c0_3] : memref<1x8x32xf32, #tpu.memory_space<vmem>>, vector<1x8x32xf32>
    %2 = vector.shape_cast %1 : vector<1x8x32xf32> to vector<8x32xf32>
    %c0_4 = arith.constant 0 : index
    %c0_5 = arith.constant 0 : index
    %3 = vector.load %arg3[%c0_4, %c0_5] : memref<1x64xf32, #tpu.memory_space<vmem>>, vector<1x64xf32>
    %c0_6 = arith.constant 0 : index
    %c0_7 = arith.constant 0 : index
    %4 = vector.load %arg4[%c0_6, %c0_7] : memref<1x64xf32, #tpu.memory_space<vmem>>, vector<1x64xf32>
    %cst = arith.constant dense<0.000000e+00> : vector<16xf32>
    %5 = vector.multi_reduction <add>, %0, %cst [1] : vector<16x64xf32> to vector<16xf32>
    %6 = vector.shape_cast %5 : vector<16xf32> to vector<16x1xf32>
    %cst_8 = arith.constant 6.400000e+01 : f32
    %7 = vector.broadcast %cst_8 : f32 to vector<16x1xf32>
    %8 = arith.divf %6, %7 : vector<16x1xf32>
    %9 = vector.broadcast %8 : vector<16x1xf32> to vector<16x64xf32>
    %10 = arith.subf %0, %9 : vector<16x64xf32>
    %11 = arith.mulf %10, %10 : vector<16x64xf32>
    %cst_9 = arith.constant dense<0.000000e+00> : vector<16xf32>
    %12 = vector.multi_reduction <add>, %11, %cst_9 [1] : vector<16x64xf32> to vector<16xf32>
    %13 = vector.shape_cast %12 : vector<16xf32> to vector<16x1xf32>
    %cst_10 = arith.constant 6.400000e+01 : f32
    %14 = vector.broadcast %cst_10 : f32 to vector<16x1xf32>
    %15 = arith.divf %13, %14 : vector<16x1xf32>
    %16 = vector.broadcast %8 : vector<16x1xf32> to vector<16x64xf32>
    %17 = arith.subf %0, %16 : vector<16x64xf32>
    %cst_11 = arith.constant 9.99999974E-6 : f32
    %18 = vector.broadcast %cst_11 : f32 to vector<16x1xf32>
    %19 = arith.addf %15, %18 : vector<16x1xf32>
    %20 = math.rsqrt %19 : vector<16x1xf32>
    %21 = vector.broadcast %20 : vector<16x1xf32> to vector<16x64xf32>
    %22 = arith.mulf %17, %21 : vector<16x64xf32>
    %23 = vector.broadcast %3 : vector<1x64xf32> to vector<16x64xf32>
    %24 = arith.mulf %22, %23 : vector<16x64xf32>
    %25 = vector.broadcast %4 : vector<1x64xf32> to vector<16x64xf32>
    %26 = arith.addf %24, %25 : vector<16x64xf32>
    %c0_12 = arith.constant 0 : index
    %c0_13 = arith.constant 0 : index
    %27 = vector.load %arg5[%c0_12, %c0_13] : memref<1x32xf32, #tpu.memory_space<vmem>>, vector<1x32xf32>
    %c0_14 = arith.constant 0 : index
    %c0_15 = arith.constant 0 : index
    %28 = vector.load %arg6[%c0_14, %c0_15] : memref<1x32xf32, #tpu.memory_space<vmem>>, vector<1x32xf32>
    %cst_16 = arith.constant dense<0.000000e+00> : vector<8xf32>
    %29 = vector.multi_reduction <add>, %2, %cst_16 [1] : vector<8x32xf32> to vector<8xf32>
    %30 = vector.shape_cast %29 : vector<8xf32> to vector<8x1xf32>
    %cst_17 = arith.constant 3.200000e+01 : f32
    %31 = vector.broadcast %cst_17 : f32 to vector<8x1xf32>
    %32 = arith.divf %30, %31 : vector<8x1xf32>
    %33 = vector.broadcast %32 : vector<8x1xf32> to vector<8x32xf32>
    %34 = arith.subf %2, %33 : vector<8x32xf32>
    %35 = arith.mulf %34, %34 : vector<8x32xf32>
    %cst_18 = arith.constant dense<0.000000e+00> : vector<8xf32>
    %36 = vector.multi_reduction <add>, %35, %cst_18 [1] : vector<8x32xf32> to vector<8xf32>
    %37 = vector.shape_cast %36 : vector<8xf32> to vector<8x1xf32>
    %cst_19 = arith.constant 3.200000e+01 : f32
    %38 = vector.broadcast %cst_19 : f32 to vector<8x1xf32>
    %39 = arith.divf %37, %38 : vector<8x1xf32>
    %40 = vector.broadcast %32 : vector<8x1xf32> to vector<8x32xf32>
    %41 = arith.subf %2, %40 : vector<8x32xf32>
    %cst_20 = arith.constant 9.99999974E-6 : f32
    %42 = vector.broadcast %cst_20 : f32 to vector<8x1xf32>
    %43 = arith.addf %39, %42 : vector<8x1xf32>
    %44 = math.rsqrt %43 : vector<8x1xf32>
    %45 = vector.broadcast %44 : vector<8x1xf32> to vector<8x32xf32>
    %46 = arith.mulf %41, %45 : vector<8x32xf32>
    %47 = vector.broadcast %27 : vector<1x32xf32> to vector<8x32xf32>
    %48 = arith.mulf %46, %47 : vector<8x32xf32>
    %49 = vector.broadcast %28 : vector<1x32xf32> to vector<8x32xf32>
    %50 = arith.addf %48, %49 : vector<8x32xf32>
    %c0_21 = arith.constant 0 : index
    %c0_22 = arith.constant 0 : index
    %51 = vector.load %arg7[%c0_21, %c0_22] : memref<64x16xf32, #tpu.memory_space<vmem>>, vector<64x16xf32>
    %cst_23 = arith.constant dense<0.000000e+00> : vector<16x16xf32>
    %52 = tpu.matmul %26, %51, %cst_23 {dimension_numbers = #tpu.dot_dimension_numbers<[1], [0], [0], [1], [0, 0, 1, 1], [], []>} : vector<16x64xf32>, vector<64x16xf32>, vector<16x16xf32> -> vector<16x16xf32>
    %c0_24 = arith.constant 0 : index
    %c0_25 = arith.constant 0 : index
    %53 = vector.load %arg8[%c0_24, %c0_25] : memref<32x32xf32, #tpu.memory_space<vmem>>, vector<32x32xf32>
    %cst_26 = arith.constant dense<0.000000e+00> : vector<8x32xf32>
    %54 = tpu.matmul %50, %53, %cst_26 {dimension_numbers = #tpu.dot_dimension_numbers<[1], [0], [0], [1], [0, 0, 1, 1], [], []>} : vector<8x32xf32>, vector<32x32xf32>, vector<8x32xf32> -> vector<8x32xf32>
    %55 = vector.extract_strided_slice %54 {offsets = [0, 0], sizes = [8, 16], strides = [1, 1]} : vector<8x32xf32> to vector<8x16xf32>
    %56 = vector.extract_strided_slice %54 {offsets = [0, 16], sizes = [8, 16], strides = [1, 1]} : vector<8x32xf32> to vector<8x16xf32>
    %c0_27 = arith.constant 0 : index
    %c0_28 = arith.constant 0 : index
    %57 = vector.load %arg9[%c0_27, %c0_28] : memref<16x64xf32, #tpu.memory_space<vmem>>, vector<16x64xf32>
    %cst_29 = arith.constant dense<0.000000e+00> : vector<16x8xf32>
    %58 = tpu.matmul %52, %55, %cst_29 {dimension_numbers = #tpu.dot_dimension_numbers<[1], [1], [0], [0], [0, 0, 1, 0], [], []>} : vector<16x16xf32>, vector<8x16xf32>, vector<16x8xf32> -> vector<16x8xf32>
    %cst_30 = arith.constant dense<0xFF800000> : vector<16xf32>
    %59 = vector.multi_reduction <maximumf>, %58, %cst_30 [1] : vector<16x8xf32> to vector<16xf32>
    %60 = vector.shape_cast %59 : vector<16xf32> to vector<16x1xf32>
    %61 = vector.broadcast %60 : vector<16x1xf32> to vector<16x8xf32>
    %62 = arith.subf %58, %61 : vector<16x8xf32>
    %63 = math.exp %62 : vector<16x8xf32>
    %cst_31 = arith.constant dense<0.000000e+00> : vector<16xf32>
    %64 = vector.multi_reduction <add>, %63, %cst_31 [1] : vector<16x8xf32> to vector<16xf32>
    %65 = vector.shape_cast %64 : vector<16xf32> to vector<16x1xf32>
    %66 = tpu.reciprocal %65 {approx = true} : vector<16x1xf32> -> vector<16x1xf32>
    %67 = vector.broadcast %66 : vector<16x1xf32> to vector<16x8xf32>
    %68 = arith.mulf %63, %67 : vector<16x8xf32>
    %cst_32 = arith.constant dense<0.000000e+00> : vector<16x16xf32>
    %69 = tpu.matmul %68, %56, %cst_32 {dimension_numbers = #tpu.dot_dimension_numbers<[1], [0], [0], [1], [0, 0, 1, 1], [], []>} : vector<16x8xf32>, vector<8x16xf32>, vector<16x16xf32> -> vector<16x16xf32>
    %cst_33 = arith.constant dense<0.000000e+00> : vector<16x64xf32>
    %70 = tpu.matmul %69, %57, %cst_33 {dimension_numbers = #tpu.dot_dimension_numbers<[1], [0], [0], [1], [0, 0, 1, 1], [], []>} : vector<16x16xf32>, vector<16x64xf32>, vector<16x64xf32> -> vector<16x64xf32>
    %c0_34 = arith.constant 0 : index
    %c0_35 = arith.constant 0 : index
    %71 = vector.load %arg10[%c0_34, %c0_35] : memref<1x64xf32, #tpu.memory_space<vmem>>, vector<1x64xf32>
    %72 = vector.broadcast %71 : vector<1x64xf32> to vector<16x64xf32>
    %73 = arith.addf %70, %72 : vector<16x64xf32>
    %74 = arith.addf %0, %73 : vector<16x64xf32>
    %c0_36 = arith.constant 0 : index
    %c0_37 = arith.constant 0 : index
    %75 = vector.load %arg11[%c0_36, %c0_37] : memref<1x64xf32, #tpu.memory_space<vmem>>, vector<1x64xf32>
    %c0_38 = arith.constant 0 : index
    %c0_39 = arith.constant 0 : index
    %76 = vector.load %arg12[%c0_38, %c0_39] : memref<1x64xf32, #tpu.memory_space<vmem>>, vector<1x64xf32>
    %c0_40 = arith.constant 0 : index
    %c0_41 = arith.constant 0 : index
    %77 = vector.load %arg13[%c0_40, %c0_41] : memref<64x512xf32, #tpu.memory_space<vmem>>, vector<64x512xf32>
    %c0_42 = arith.constant 0 : index
    %c0_43 = arith.constant 0 : index
    %78 = vector.load %arg14[%c0_42, %c0_43] : memref<1x512xf32, #tpu.memory_space<vmem>>, vector<1x512xf32>
    %c0_44 = arith.constant 0 : index
    %c0_45 = arith.constant 0 : index
    %79 = vector.load %arg15[%c0_44, %c0_45] : memref<256x64xf32, #tpu.memory_space<vmem>>, vector<256x64xf32>
    %c0_46 = arith.constant 0 : index
    %c0_47 = arith.constant 0 : index
    %80 = vector.load %arg16[%c0_46, %c0_47] : memref<1x64xf32, #tpu.memory_space<vmem>>, vector<1x64xf32>
    %cst_48 = arith.constant dense<0.000000e+00> : vector<16xf32>
    %81 = vector.multi_reduction <add>, %74, %cst_48 [1] : vector<16x64xf32> to vector<16xf32>
    %82 = vector.shape_cast %81 : vector<16xf32> to vector<16x1xf32>
    %cst_49 = arith.constant 6.400000e+01 : f32
    %83 = vector.broadcast %cst_49 : f32 to vector<16x1xf32>
    %84 = arith.divf %82, %83 : vector<16x1xf32>
    %85 = vector.broadcast %84 : vector<16x1xf32> to vector<16x64xf32>
    %86 = arith.subf %74, %85 : vector<16x64xf32>
    %87 = arith.mulf %86, %86 : vector<16x64xf32>
    %cst_50 = arith.constant dense<0.000000e+00> : vector<16xf32>
    %88 = vector.multi_reduction <add>, %87, %cst_50 [1] : vector<16x64xf32> to vector<16xf32>
    %89 = vector.shape_cast %88 : vector<16xf32> to vector<16x1xf32>
    %cst_51 = arith.constant 6.400000e+01 : f32
    %90 = vector.broadcast %cst_51 : f32 to vector<16x1xf32>
    %91 = arith.divf %89, %90 : vector<16x1xf32>
    %92 = vector.broadcast %84 : vector<16x1xf32> to vector<16x64xf32>
    %93 = arith.subf %74, %92 : vector<16x64xf32>
    %cst_52 = arith.constant 9.99999974E-6 : f32
    %94 = vector.broadcast %cst_52 : f32 to vector<16x1xf32>
    %95 = arith.addf %91, %94 : vector<16x1xf32>
    %96 = math.rsqrt %95 : vector<16x1xf32>
    %97 = vector.broadcast %96 : vector<16x1xf32> to vector<16x64xf32>
    %98 = arith.mulf %93, %97 : vector<16x64xf32>
    %99 = vector.broadcast %75 : vector<1x64xf32> to vector<16x64xf32>
    %100 = arith.mulf %98, %99 : vector<16x64xf32>
    %101 = vector.broadcast %76 : vector<1x64xf32> to vector<16x64xf32>
    %102 = arith.addf %100, %101 : vector<16x64xf32>
    %cst_53 = arith.constant dense<0.000000e+00> : vector<16x512xf32>
    %103 = tpu.matmul %102, %77, %cst_53 {dimension_numbers = #tpu.dot_dimension_numbers<[1], [0], [0], [1], [0, 0, 1, 1], [], []>} : vector<16x64xf32>, vector<64x512xf32>, vector<16x512xf32> -> vector<16x512xf32>
    %104 = vector.broadcast %78 : vector<1x512xf32> to vector<16x512xf32>
    %105 = arith.addf %103, %104 : vector<16x512xf32>
    %106 = vector.extract_strided_slice %105 {offsets = [0, 0], sizes = [16, 256], strides = [1, 1]} : vector<16x512xf32> to vector<16x256xf32>
    %107 = vector.extract_strided_slice %105 {offsets = [0, 256], sizes = [16, 256], strides = [1, 1]} : vector<16x512xf32> to vector<16x256xf32>
    %cst_54 = arith.constant 5.000000e-01 : f32
    %108 = vector.broadcast %cst_54 : f32 to vector<16x256xf32>
    %109 = arith.mulf %108, %107 : vector<16x256xf32>
    %cst_55 = arith.constant 0.707106769 : f32
    %110 = vector.broadcast %cst_55 : f32 to vector<16x256xf32>
    %111 = arith.mulf %107, %110 : vector<16x256xf32>
    %112 = math.erf %111 : vector<16x256xf32>
    %cst_56 = arith.constant 1.000000e+00 : f32
    %113 = vector.broadcast %cst_56 : f32 to vector<16x256xf32>
    %114 = arith.addf %113, %112 : vector<16x256xf32>
    %115 = arith.mulf %109, %114 : vector<16x256xf32>
    %116 = arith.mulf %106, %115 : vector<16x256xf32>
    %cst_57 = arith.constant dense<0.000000e+00> : vector<16x64xf32>
    %117 = tpu.matmul %116, %79, %cst_57 {dimension_numbers = #tpu.dot_dimension_numbers<[1], [0], [0], [1], [0, 0, 1, 1], [], []>} : vector<16x256xf32>, vector<256x64xf32>, vector<16x64xf32> -> vector<16x64xf32>
    %118 = vector.broadcast %80 : vector<1x64xf32> to vector<16x64xf32>
    %119 = arith.addf %117, %118 : vector<16x64xf32>
    %120 = arith.addf %74, %119 : vector<16x64xf32>
    %c0_58 = arith.constant 0 : index
    %c0_59 = arith.constant 0 : index
    %c0_60 = arith.constant 0 : index
    %121 = vector.load %arg17[%c0_58, %c0_59, %c0_60] : memref<1x16x64xf32, #tpu.memory_space<vmem>>, vector<1x16x64xf32>
    %122 = vector.shape_cast %121 : vector<1x16x64xf32> to vector<16x64xf32>
    %123 = vector.shape_cast %120 : vector<16x64xf32> to vector<1x16x64xf32>
    tpu.vector_store %arg17[%c0_58, %c0_59, %c0_60], %123 {strides = array<i32>} : memref<1x16x64xf32, #tpu.memory_space<vmem>>, vector<1x16x64xf32>,
    return
  }
  func.func @transform_0(%arg0: i32) -> (i32, i32) {
    %c0_i32 = arith.constant 0 : i32
    %c0_i32_0 = arith.constant 0 : i32
    %c0_i32_1 = arith.constant 0 : i32
    return %c0_i32, %c0_i32_0 : i32, i32
  }
  func.func @transform_1(%arg0: i32) -> (i32, i32, i32) {
    %c0_i32 = arith.constant 0 : i32
    %c0_i32_0 = arith.constant 0 : i32
    %c0_i32_1 = arith.constant 0 : i32
    return %arg0, %c0_i32, %c0_i32_0 : i32, i32, i32
  }
  func.func @transform_2(%arg0: i32) -> (i32, i32) {
    %c0_i32 = arith.constant 0 : i32
    %c0_i32_0 = arith.constant 0 : i32
    %c0_i32_1 = arith.constant 0 : i32
    return %c0_i32, %c0_i32_0 : i32, i32
  }
  func.func @transform_3(%arg0: i32) -> (i32, i32) {
    %c0_i32 = arith.constant 0 : i32
    %c0_i32_0 = arith.constant 0 : i32
    %c0_i32_1 = arith.constant 0 : i32
    return %c0_i32, %c0_i32_0 : i32, i32
  }
  func.func @transform_4(%arg0: i32) -> (i32, i32) {
    %c0_i32 = arith.constant 0 : i32
    %c0_i32_0 = arith.constant 0 : i32
    %c0_i32_1 = arith.constant 0 : i32
    return %c0_i32, %c0_i32_0 : i32, i32
  }
  func.func @transform_5(%arg0: i32) -> (i32, i32) {
    %c0_i32 = arith.constant 0 : i32
    %c0_i32_0 = arith.constant 0 : i32
    %c0_i32_1 = arith.constant 0 : i32
    return %c0_i32, %c0_i32_0 : i32, i32
  }
  func.func @transform_6(%arg0: i32) -> (i32, i32) {
    %c0_i32 = arith.constant 0 : i32
    %c0_i32_0 = arith.constant 0 : i32
    %c0_i32_1 = arith.constant 0 : i32
    return %c0_i32, %c0_i32_0 : i32, i32
  }
  func.func @transform_7(%arg0: i32) -> (i32, i32) {
    %c0_i32 = arith.constant 0 : i32
    %c0_i32_0 = arith.constant 0 : i32
    %c0_i32_1 = arith.constant 0 : i32
    return %c0_i32, %c0_i32_0 : i32, i32
  }
  func.func @transform_8(%arg0: i32) -> (i32, i32) {
    %c0_i32 = arith.constant 0 : i32
    %c0_i32_0 = arith.constant 0 : i32
    %c0_i32_1 = arith.constant 0 : i32
    return %c0_i32, %c0_i32_0 : i32, i32
  }
  func.func @transform_9(%arg0: i32) -> (i32, i32) {
    %c0_i32 = arith.constant 0 : i32
    %c0_i32_0 = arith.constant 0 : i32
    %c0_i32_1 = arith.constant 0 : i32
    return %c0_i32, %c0_i32_0 : i32, i32
  }
  func.func @transform_10(%arg0: i32) -> (i32, i32) {
    %c0_i32 = arith.constant 0 : i32
    %c0_i32_0 = arith.constant 0 : i32
    %c0_i32_1 = arith.constant 0 : i32
    return %c0_i32, %c0_i32_0 : i32, i32
  }
  func.func @transform_11(%arg0: i32) -> (i32, i32) {
    %c0_i32 = arith.constant 0 : i32
    %c0_i32_0 = arith.constant 0 : i32
    %c0_i32_1 = arith.constant 0 : i32
    return %c0_i32, %c0_i32_0 : i32, i32
  }
  func.func @transform_12(%arg0: i32) -> (i32, i32) {
    %c0_i32 = arith.constant 0 : i32
    %c0_i32_0 = arith.constant 0 : i32
    %c0_i32_1 = arith.constant 0 : i32
    return %c0_i32, %c0_i32_0 : i32, i32
  }
  func.func @transform_13(%arg0: i32) -> (i32, i32) {
    %c0_i32 = arith.constant 0 : i32
    %c0_i32_0 = arith.constant 0 : i32
    %c0_i32_1 = arith.constant 0 : i32
    return %c0_i32, %c0_i32_0 : i32, i32
  }
  func.func @transform_14(%arg0: i32) -> (i32, i32) {
    %c0_i32 = arith.constant 0 : i32
    %c0_i32_0 = arith.constant 0 : i32
    %c0_i32_1 = arith.constant 0 : i32
    return %c0_i32, %c0_i32_0 : i32, i32
  }
  func.func @transform_15(%arg0: i32) -> (i32, i32) {
    %c0_i32 = arith.constant 0 : i32
    %c0_i32_0 = arith.constant 0 : i32
    %c0_i32_1 = arith.constant 0 : i32
    return %c0_i32, %c0_i32_0 : i32, i32
  }
  func.func @transform_16(%arg0: i32) -> (i32, i32, i32) {
    %c0_i32 = arith.constant 0 : i32
    %c0_i32_0 = arith.constant 0 : i32
    %c0_i32_1 = arith.constant 0 : i32
    return %arg0, %c0_i32, %c0_i32_0 : i32, i32, i32
  }
}

</mosaic_0001>

<bundles_post_ra>
// kernel: tpu_custom_call.1
= control target key start
LH: loop header
LB: loop body
LE: loop exit
PB: predicated region body
PF: predicated region fallthrough
CT: control target
= control target key end

     0   :  { %s2425_s0 = inlined_call_operand.vmem [shape: f32[16,64], index: 0, kind: input, shape index: {}]   ;;  %s2426_s1 = inlined_call_operand.vmem [shape: f32[2,8,32], index: 1, kind: input, shape index: {}]   ;;  %s2427_s2 = inlined_call_operand.vmem [shape: f32[1,64], index: 2, kind: input, shape index: {}]   ;;  %s2428_s3 = inlined_call_operand.vmem [shape: f32[1,64], index: 3, kind: input, shape index: {}]   ;;  %s2429_s4 = inlined_call_operand.vmem [shape: f32[1,32], index: 4, kind: input, shape index: {}]   ;;  %s2430_s5 = inlined_call_operand.vmem [shape: f32[1,32], index: 5, kind: input, shape index: {}]   ;;  %s2431_s6 = inlined_call_operand.vmem [shape: f32[64,16], index: 6, kind: input, shape index: {}]   ;;  %s2432_s7 = inlined_call_operand.vmem [shape: f32[32,32], index: 7, kind: input, shape index: {}]   ;;  %s2433_s8 = inlined_call_operand.vmem [shape: f32[16,64], index: 8, kind: input, shape index: {}]   ;;  %s2434_s9 = inlined_call_operand.vmem [shape: f32[1,64], index: 9, kind: input, shape index: {}]   ;;  %s2435_s10 = inlined_call_operand.vmem [shape: f32[1,64], index: 10, kind: input, shape index: {}]   ;;  %s2436_s11 = inlined_call_operand.vmem [shape: f32[1,64], index: 11, kind: input, shape index: {}]   ;;  %s2437_s12 = inlined_call_operand.vmem [shape: f32[64,512], index: 12, kind: input, shape index: {}]   ;;  %s2438_s13 = inlined_call_operand.vmem [shape: f32[1,512], index: 13, kind: input, shape index: {}]   ;;  %s2439_s14 = inlined_call_operand.vmem [shape: f32[256,64], index: 14, kind: input, shape index: {}]   ;;  %s2440_s15 = inlined_call_operand.vmem [shape: f32[1,64], index: 15, kind: input, shape index: {}]   ;;  %s2441_s16 = inlined_call_operand.hbm [shape: f32[2,16,64], index: 16, kind: output, shape index: {}]  }
   0x1   :  { %2447 = sst [smem:[#allocation9_spill]] %s2425_s0 }
   0x2   :  { %2448 = sst [smem:[#allocation10_spill]] %s2426_s1 }
   0x3   :  { %2449 = sst [smem:[#allocation11_spill]] %s2427_s2 }
   0x4   :  { %21 = vsyncpa [#allocation3], 0 }
   0x5   :  { %23 = vsyncpa [#allocation3 + $0x1], 0  ;;  %s1984_s21 = smov 0   ;;  %s1986_s22 = smov 0  }
   0x6   :  { %s1988_s23 = smov 0   ;;  %s1990_s24 = smov 0  }
   0x7 LB: > { %2450 = sst [smem:[#allocation5_spill]] %s1886_s23  ;;  %s2005_s25 = sadd.s32 4294967295, %s1890_s24   ;;  %s1890_s24 = sphi %s1990_s24, %s2460_s24   ;;  %s1886_s23 = sphi %s1988_s23, %s2462_s23   ;;  %s1882_s22 = sphi %s1986_s22, %s2464_s22   ;;  %s1878_s21 = sphi %s1984_s21, %s2463_s21  }
   0x8   : > { %s1523_s26 = sadd.s32 4294967294, %s1890_s24   ;;  %s2009_s27 = sadd.s32 1, %s1890_s24  }
   0x9   : > { %2451 = sst [smem:[#allocation6_spill]] %s2009_s27  ;;  %s377_s28 = sadd.s32 1, %s1886_s23 }
   0xa   : > { %s374_s29 = ssub.s32 %s1890_s24, %s2009_s27  ;;  %p387_p0 = scmp.ne.s32.totalorder %s1886_s23, %s1882_s22 }
   0xb   : > { %p375_p1 = scmp.eq.s32.totalorder %s374_s29, 0  ;;  %p388_p2 = scmp.eq.s32.totalorder %s2005_s25, 1 }
   0xc   : > { %p393_p3 = scmp.ne.s32.totalorder %s1882_s22, %s1878_s21  ;;  %p394_p4 = scmp.eq.s32.totalorder %s1523_s26, 1 }
   0xd   : > { %s2020_s30 = scalar_select %p375_p1, %s1886_s23, %s377_s28  }
   0xe   : > { %p2022_p5 = por %p388_p2, %p387_p0  ;;  %p2026_p6 = por %p394_p4, %p393_p3 }
   0xf   : > { %2452 = sst [smem:[#allocation7_spill]] %s2020_s30  ;;  %p1526_p7 = scmp.ge.s32.totalorder %s1890_s24, 1 }
  0x10   : > { %s2454_s17 = scalar_select %p2026_p6, 1, 0 }
  0x11   : > { %p464_p8 = scmp.lt.s32.totalorder %s1890_s24, 3 }
  0x12   : > { %2455 = sst [smem:[#allocation8_spill]] %s2454_s17 }
  0x13   : > { %p465_p9 = pnand %p1526_p7, %p464_p8 }
  0x14   : > { %p513_p10 = scmp.lt.s32.totalorder (!%p465_p9), %s2005_s25, 1  ;;  %s2456_s20 = sld [smem:[#allocation9_spill]] (!%p465_p9)  ;;  %vm522_vm0 = vcmask (!%p465_p9), 523264   ;;  %vm568_vm1 = vcmask (!%p465_p9), 261120   ;;  %v597_v21 = vld [vmem:[%s2431_s6] sm:$0xff] (!%p465_p9)  ;;  %v598_v22 = vld [vmem:[%s2431_s6 + $0x8] sm:$0xff] (!%p465_p9) }
  0x15   : > { %468 = sbr.rel (%p465_p9) target bundleno = 2327 (0x917), region = 84  ;;  %s2457_s1 = sld [smem:[#allocation10_spill]] (!%p465_p9)  ;;  %v1667_v23 = vpack.c.bf16 (!%p465_p9), %v598_v22, %v597_v21  ;;  %v599_v24 = vld [vmem:[%s2431_s6 + $0x10] sm:$0xff] (!%p465_p9)  ;;  %v600_v25 = vld [vmem:[%s2431_s6 + $0x18] sm:$0xff] (!%p465_p9)  ;;  %v686_v26 = vld [vmem:[%s2432_s7] sm:$0xff] (!%p465_p9)  ;;  %v1892_v27 = vmov (!%p465_p9), 0.0|0.0  }
  0x16   : > { %1683 = vmatprep.subr.bf16.mxu1 (!%p465_p9), %v1892_v27  ;;  %v1671_v28 = vpack.c.bf16 (!%p465_p9), %v600_v25, %v599_v24  ;;  %v687_v29 = vld [vmem:[%s2432_s7 + $0x8] sm:$0xff] (!%p465_p9)  ;;  %v601_v30 = vld [vmem:[%s2431_s6 + $0x20] sm:$0xff] (!%p465_p9)  ;;  %vm1893_vm2 = vmmov (!%p465_p9), 0   ;;  %v1894_v32 = vmov (!%p465_p9), 0.0   ;;  %v688_v34 = vld [vmem:[%s2432_s7 + $0x10] sm:$0xff] (!%p465_p9)  ;;  %s2458_s2 = sld [smem:[#allocation11_spill]] (!%p465_p9) }
  0x17   : > { %v602_v31 = vld [vmem:[%s2431_s6 + $0x28] sm:$0xff] (!%p465_p9)  ;;  %1647 = vmatprep.mubr.msk.f32.mxu1 (!%p465_p9), %vm1893_vm2, %v1894_v32  ;;  %1668 = vmatprep.subr.bf16.mxu0 (!%p465_p9), %v1667_v23  ;;  %v1684_v33 = vpack.c.bf16 (!%p465_p9), %v687_v29, %v686_v26  ;;  %v689_v35 = vld [vmem:[%s2432_s7 + $0x18] sm:$0xff] (!%p465_p9)  ;;  %v603_v38 = vld [vmem:[%s2431_s6 + $0x30] sm:$0xff] (!%p465_p9)  ;;  %vm765_vm3 = vcmask (!%p465_p9), 130048   ;;  %vm850_vm4 = vcmask (!%p465_p9), 64512   ;;  %s1895_s30 = smov (!%p465_p9), 112  }
  0x18   : > { %1670 = vmatpush3.bf16.msra.mxu0 (!%p465_p9), %v1667_v23  ;;  %v1675_v36 = vpack.c.bf16 (!%p465_p9), %v602_v31, %v601_v30  ;;  %v1687_v37 = vpack.c.bf16 (!%p465_p9), %v689_v35, %v688_v34  ;;  %v604_v39 = vld [vmem:[%s2431_s6 + $0x38] sm:$0xff] (!%p465_p9)  ;;  %v1531_v51 = vld [vmem:[%s2429_s4] ss:$0 sm:$0xff] (!%p465_p9)  ;;  %v764_v23 = vld [vmem:[%s2433_s8 + $0x8] sm:$0xff] (!%p465_p9)  ;;  %s510_s18 = sand.u32 (!%p465_p9), 1, %s1882_s22   ;;  %s1896_s19 = smov (!%p465_p9), [#allocation2]  }
  0x19   : > { %1672 = vmatprep.subr.bf16.mxu0 (!%p465_p9), %v1671_v28  ;;  %1685 = vmatpush3.bf16.msra.mxu1 (!%p465_p9), %v1684_v33  ;;  %v1679_v40 = vpack.c.bf16 (!%p465_p9), %v604_v39, %v603_v38  ;;  %v1532_v53 = vld [vmem:[%s2430_s5] ss:$0 sm:$0xff] (!%p465_p9) }
  0x1a   : > { %v2036_v0 = vld [vmem:[%s2456_s20 + $0x8] sm:$0xff] (!%p465_p9)  ;;  %v2047_v3 = vld [vmem:[%s2456_s20] sm:$0xff] (!%p465_p9)  ;;  %1686 = vmatprep.subr.bf16.mxu1 (!%p465_p9), %v1892_v27 }
  0x1b   : > { %v526_v1 = vsel (!%p465_p9), %vm522_vm0, %v2036_v0, 0.0  ;;  %v523_v5 = vsel (!%p465_p9), %vm522_vm0, %v2047_v3, 0.0  ;;  %v1530_v60 = vld [vmem:[%s2428_s3] ss:$0 sm:$0xff] (!%p465_p9) }
  0x1c   : > { %s514_s26 = scalar_select %p513_p10, %s2005_s25, 1  ;;  %527 = vadd.xlane.f32.xlu1 %v526_v1  ;;  %1674 = vmatpush3.bf16.msra.mxu0 %v1671_v28  ;;  %v1529_v56 = vld [vmem:[%s2458_s2] ss:$0 sm:$0xff] }
  0x1d   : > { %1676 = vmatprep.subr.bf16.mxu0 %v1675_v36  ;;  %1688 = vmatpush3.bf16.msra.mxu1 %v1687_v37  ;;  %v763_v22 = vld [vmem:[%s2433_s8] sm:$0xff] }
  0x1e   : > { %s1528_s28 = sshll.u32 %s514_s26, 3  ;;  %v1689_v24 = vpack.c.bf16 %v764_v23, %v763_v22  ;;  %v1541_v35 = vld [vmem:[%s2434_s9] ss:$0 sm:$0xff]  ;;  %s1527_s26 = sshll.u32 %s510_s18, 4 }
  0x1f   : > { %s516_s23 = scalar_lea.vmem %s2457_s1, %s1528_s28  ;;  %s1556_s28 = sshll.u32 %s2005_s25, 8 }
  0x20   : > { %v519_v2 = vld [vmem:[%s516_s23] sm:$0xff]  ;;  %1678 = vmatpush3.bf16.msra.mxu0 %v1675_v36  ;;  %s512_s29 = scalar_lea.vmem [#allocation2], %s1527_s26  ;;  %s2384_s25 = scalar_lea.sflag [#allocation3], %s510_s18 }
  0x21   : > { %v569_v4 = vsel %vm568_vm1, %v519_v2, 0.0  ;;  %1680 = vmatprep.subr.bf16.mxu0 %v1679_v40  ;;  %s1461_s23 = sshll.u32 %s512_s29, 4  ;;  %s1832_s1 = sshll.u32 %s1896_s19, 4  ;;  %s2380_s23 = int_to_ptr.vmem [resolvable:$true] %s1461_s23  ;;  %s1833_s1 = int_to_ptr.vmem [resolvable:$false] %s1832_s1 }
  0x22   : > { %570 = vadd.xlane.f32.xlu0 %v569_v4  ;;  %s1828_s17 = scalar_lea.vmem %s2380_s23, 256  ;;  %s1834_s26 = scalar_lea.vmem %s1833_s1, 512 }
  0x23   : > { %p1829_p11 = scmp.ne.s32.totalorder %s2380_s23, %s1828_s17  ;;  %p1835_p0 = scmp.lt.s32.totalorder %s2380_s23, %s1833_s1 }
  0x24   : > { %1682 = vmatpush3.bf16.msra.mxu0 %v1679_v40  ;;  %p1836_p1 = scmp.lt.s32.totalorder %s1834_s26, %s1828_s17 }
  0x25   : > { %1690 = vmatprep.subr.bf16.mxu0 %v1689_v24  ;;  %p1830_p12 = pnand %p1829_p11, %p2022_p5 }
  0x26   : > { %524 = vadd.xlane.f32.xlu0 %v523_v5  ;;  %p1837_p2 = por %p1836_p1, %p1835_p0 }
  0x27   : > { %p1831_p13 = pneg %p1830_p12 }
  0x29   : > { %p1838_p3 = pnand %p1837_p2, %p1831_p13 }
  0xa9   : > { %v528_v6 = vpop.xlane.xlu1 %527 }
  0xaa   : > { %v531_v7 = vmul.f32 0.015625, %v528_v6 }
  0xac   : > { %v2053_v10 = vsub.f32 %v2036_v0, %v531_v7 }
  0xae   : > { %v535_v15 = vmul.f32 %v2053_v10, %v2053_v10 }
  0xaf   : > { %v571_v8 = vpop.xlane.xlu0 %570 }
  0xb0   : > { %v573_v9 = vmul.f32 0.03125, %v571_v8  ;;  %v539_v18 = vsel %vm522_vm0, %v535_v15, 0.0 }
  0xb2   : > { %v574_v11 = vsub.f32 %v519_v2, %v573_v9 }
  0xb3   : > { %v525_v12 = vpop.xlane.xlu0 %524 }
  0xb4   : > { %v530_v13 = vmul.f32 0.015625, %v525_v12  ;;  %v575_v14 = vmul.f32 %v574_v11, %v574_v11 }
  0xb6   : > { %v2058_v16 = vsub.f32 %v2047_v3, %v530_v13  ;;  %v576_v17 = vsel %vm568_vm1, %v575_v14, 0.0 }
  0xb7   : > { %577 = vadd.xlane.f32.xlu1 %v576_v17 }
  0xb8   : > { %v534_v19 = vmul.f32 %v2058_v16, %v2058_v16 }
  0xba   : > { %v536_v20 = vsel %vm522_vm0, %v534_v19, 0.0 }
  0xbb   : > { %540 = vadd.xlane.f32.xlu1 %v539_v18  ;;  %537 = vadd.xlane.f32.xlu0 %v536_v20 }
 0x144   : > { %v578_v41 = vpop.xlane.xlu1 %577 }
 0x145   : > { %v579_v42 = vmul.f32 0.03125, %v578_v41 }
 0x147   : > { %v580_v43 = vadd.f32 1e-05, %v579_v42 }
 0x148   : > { %v541_v44 = vpop.xlane.xlu1 %540  ;;  %v538_v45 = vpop.xlane.xlu0 %537 }
 0x149   : > { %1802 = vrsqrt.f32 %v580_v43  ;;  %v543_v46 = vmul.f32 0.015625, %v541_v44  ;;  %v542_v47 = vmul.f32 0.015625, %v538_v45 }
 0x14b   : > { %v545_v48 = vadd.f32 1e-05, %v543_v46  ;;  %v544_v49 = vadd.f32 1e-05, %v542_v47 }
 0x14d   : > { %1804 = vrsqrt.f32 %v545_v48 }
 0x14e   : > { %1806 = vrsqrt.f32 %v544_v49 }
 0x153   : > { %v1803_v50 = vpop.eup %1802 }
 0x154   : > { %v582_v52 = vmul.f32 %v1803_v50, %v574_v11 }
 0x156   : > { %v589_v54 = vmul.f32 %v1531_v51, %v582_v52  ;;  %v1050_v52 = vld [vmem:[%s2437_s12 + $0x8] sm:$0xff] }
 0x157   : > { %v1805_v55 = vpop.eup %1804 }
 0x158   : > { %v1807_v57 = vpop.eup %1806  ;;  %v596_v58 = vadd.f32 %v1532_v53, %v589_v54  ;;  %v549_v59 = vmul.f32 %v1805_v55, %v2053_v10  ;;  %v1054_v53 = vld [vmem:[%s2437_s12 + $0x28] sm:$0xff]  ;;  %v1049_v55 = vld [vmem:[%s2437_s12] sm:$0xff] }
 0x159   : > { %v548_v61 = vmul.f32 %v1807_v57, %v2058_v16  ;;  %v1693_v54 = vpack.c.bf16 %v1054_v53, %v1050_v52  ;;  %v1075_v52 = vld [vmem:[%s2437_s12 + $0xd0] sm:$0xff] }
 0x15a   : > { %1648 = vmatmul.mubr.msk.f32.vlgmr.msra.gmra.mrb[0].mxu1 %vm568_vm1, %v596_v58  ;;  %v557_v62 = vmul.f32 %v1529_v56, %v549_v59  ;;  %v1058_v58 = vld [vmem:[%s2437_s12 + $0x48] sm:$0xff]  ;;  %v1079_v53 = vld [vmem:[%s2437_s12 + $0xf0] sm:$0xff] }
 0x15b   : > { %v556_v63 = vmul.f32 %v1529_v56, %v548_v61  ;;  %v1053_v56 = vld [vmem:[%s2437_s12 + $0x20] sm:$0xff]  ;;  %v1062_v59 = vld [vmem:[%s2437_s12 + $0x68] sm:$0xff] }
 0x15c   : > { %v565_v1 = vadd.f32 %v1530_v60, %v557_v62  ;;  %v1695_v57 = vpack.c.bf16 %v1053_v56, %v1049_v55  ;;  %v1057_v61 = vld [vmem:[%s2437_s12 + $0x40] sm:$0xff]  ;;  %v1099_v56 = vld [vmem:[%s2439_s14 + $0x88] sm:$0xff] }
 0x15d   : > { %v564_v2 = vadd.f32 %v1530_v60, %v556_v63  ;;  %v1697_v60 = vpack.c.bf16 %v1062_v59, %v1058_v58  ;;  %v1061_v62 = vld [vmem:[%s2437_s12 + $0x60] sm:$0xff]  ;;  %v1083_v59 = vld [vmem:[%s2439_s14 + $0x8] sm:$0xff] }
 0x15e   : > { %v1699_v63 = vpack.c.bf16 %v1061_v62, %v1057_v61  ;;  %v1098_v55 = vld [vmem:[%s2439_s14 + $0x80] sm:$0xff]  ;;  %v1101_v61 = vld [vmem:[%s2439_s14 + $0x98] sm:$0xff]  ;;  %v1084_v62 = vld [vmem:[%s2439_s14 + $0x10] sm:$0xff] }
 0x15f   : > { %1636 = vmatprep.mubr.msk.f32.mxu0 %vm522_vm0, %v564_v2  ;;  %v1070_v2 = vld [vmem:[%s2437_s12 + $0xa8] sm:$0xff]  ;;  %v1082_v58 = vld [vmem:[%s2439_s14] sm:$0xff] }
 0x160   : > { %1637 = vmatmul.mubr.msk.f32.vlgmr.msra.gmra.mrb[0].mxu0 %vm522_vm0, %v565_v1  ;;  %v1066_v1 = vld [vmem:[%s2437_s12 + $0x88] sm:$0xff] }
 0x161   : > { %1692 = vmatpush3.bf16.msra.mxu0 %v1689_v24  ;;  %v1544_v24 = vld [vmem:[%s2435_s10] ss:$0 sm:$0xff] }
 0x162   : > { %1694 = vmatprep.subr.bf16.mxu0 %v1693_v54  ;;  %v1723_v54 = vpack.c.bf16 %v1079_v53, %v1075_v52 }
 0x22d   : > { %v759_v4 = vpop.f32.mrb[0].mxu1 }
 0x22e   : > { %v1649_v5 = vpop.f32.mrb[1].mxu1  ;;  %1650 = vmatprep.subr.msk.mxu1 %vm765_vm3, %v759_v4 }
 0x22f   : > { %1651 = vmatpush3.xpose.msk.msra.mxu1 %vm765_vm3, %v759_v4  ;;  %v1065_v5 = vld [vmem:[%s2437_s12 + $0x80] sm:$0xff] }
 0x233   : > { %v1638_v6 = vpop.f32.mrb[0].mxu0 }
 0x234   : > { %v677_v7 = vpop.f32.mrb[1].mxu0 }
 0x235   : > { %1652 = vmatprep.mubr.msk.f32.mxu1 %vm765_vm3, %v677_v7 }
 0x236   : > { %1653 = vmatmul.mubr.msk.f32.vlgmr.msra.gmra.mrb[2].mxu1 %vm765_vm3, %v1638_v6  ;;  %v1069_v6 = vld [vmem:[%s2437_s12 + $0xa0] sm:$0xff] }
 0x237   : > { %v1703_v7 = vpack.c.bf16 %v1069_v6, %v1065_v5  ;;  %v1103_v5 = vld [vmem:[%s2439_s14 + $0xa8] sm:$0xff] }
 0x309   : > { %v1654_v8 = vpop.f32.mrb[2].mxu1 }
 0x30a   : > { %v841_v9 = vpop.f32.mrb[3].mxu1  ;;  %v854_v10 = vsel %vm850_vm4, %v1654_v8, -inf }
 0x30b   : > { %855 = vmax.xlane.f32.xlu1 %v854_v10  ;;  %v851_v11 = vsel %vm850_vm4, %v841_v9, -inf }
 0x30c   : > { %852 = vmax.xlane.f32.xlu0 %v851_v11  ;;  %v1073_v11 = vld [vmem:[%s2437_s12 + $0xc0] sm:$0xff] }
 0x398   : > { %v856_v12 = vpop.xlane.xlu1 %855 }
 0x399   : > { %v858_v13 = vsub.f32 %v1654_v8, %v856_v12  ;;  %v853_v14 = vpop.xlane.xlu0 %852  ;;  %v1074_v8 = vld [vmem:[%s2437_s12 + $0xc8] sm:$0xff]  ;;  %v1077_v12 = vld [vmem:[%s2437_s12 + $0xe0] sm:$0xff] }
 0x39a   : > { %v857_v15 = vsub.f32 %v841_v9, %v853_v14  ;;  %v1078_v9 = vld [vmem:[%s2437_s12 + $0xe8] sm:$0xff]  ;;  %v1052_v14 = vld [vmem:[%s2437_s12 + $0x18] sm:$0xff] }
 0x39b   : > { %v861_v16 = vmul.f32 1.442695, %v858_v13  ;;  %v1705_v10 = vpack.c.bf16 %v1078_v9, %v1074_v8  ;;  %v1707_v13 = vpack.c.bf16 %v1077_v12, %v1073_v11  ;;  %v1087_v8 = vld [vmem:[%s2439_s14 + $0x28] sm:$0xff]  ;;  %v1105_v11 = vld [vmem:[%s2439_s14 + $0xb8] sm:$0xff] }
 0x39c   : > { %v859_v17 = vmul.f32 1.442695, %v857_v15  ;;  %v1056_v15 = vld [vmem:[%s2437_s12 + $0x38] sm:$0xff] }
 0x39d   : > { %1808 = vpow2.f32 %v861_v16  ;;  %v1709_v16 = vpack.c.bf16 %v1056_v15, %v1052_v14  ;;  %v1089_v14 = vld [vmem:[%s2439_s14 + $0x38] sm:$0xff] }
 0x39e   : > { %1810 = vpow2.f32 %v859_v17 }
 0x3a7   : > { %v1809_v18 = vpop.eup %1808 }
 0x3a8   : > { %v1811_v19 = vpop.eup %1810  ;;  %v866_v20 = vsel %vm850_vm4, %v1809_v18, 0.0 }
 0x3a9   : > { %867 = vadd.xlane.f32.xlu1 %v866_v20  ;;  %v863_v21 = vsel %vm850_vm4, %v1811_v19, 0.0 }
 0x3aa   : > { %864 = vadd.xlane.f32.xlu0 %v863_v21 }
 0x3c0   : > { %873 = vrot.lane.b32.xlu0 %v759_v4, %s1895_s30  ;;  %v1701_v4 = vpack.c.bf16 %v1070_v2, %v1066_v1  ;;  %s2378_s30 = scalar_lea.hbm %s2441_s16, %s1556_s28 }
 0x436   : > { %v868_v25 = vpop.xlane.xlu1 %867 }
 0x437   : > { %1812 = vrcp.f32 %v868_v25  ;;  %v865_v26 = vpop.xlane.xlu0 %864 }
 0x438   : > { %1814 = vrcp.f32 %v865_v26  ;;  %v1051_v26 = vld [vmem:[%s2437_s12 + $0x10] sm:$0xff] }
 0x43b   : > { %v874_v27 = vpop.permute.xlu0 %873 }
 0x43c   : > { %1655 = vmatprep.subr.mxu1 %v874_v27 }
 0x43d   : > { %1656 = vmatpush3.msra.mxu1 %v874_v27  ;;  %v1055_v27 = vld [vmem:[%s2437_s12 + $0x30] sm:$0xff] }
 0x441   : > { %v1813_v28 = vpop.eup %1812 }
 0x442   : > { %v1815_v29 = vpop.eup %1814  ;;  %v872_v31 = vmul.f32 %v1813_v28, %v1809_v18  ;;  %v1545_v28 = vld [vmem:[%s2436_s11] ss:$0 sm:$0xff] }
 0x443   : > { %v871_v30 = vmul.f32 %v1815_v29, %v1811_v19  ;;  %v1060_v29 = vld [vmem:[%s2437_s12 + $0x58] sm:$0xff] }
 0x445   : > { %1657 = vmatprep.mubr.msk.f32.mxu1 %vm850_vm4, %v871_v30  ;;  %v1064_v30 = vld [vmem:[%s2437_s12 + $0x78] sm:$0xff] }
 0x446   : > { %1658 = vmatmul.mubr.msk.f32.vlgmr.msra.gmra.mrb[4].mxu1 %vm850_vm4, %v872_v31 }
 0x519   : > { %v1659_v33 = vpop.f32.mrb[4].mxu1 }
 0x51a   : > { %v948_v34 = vpop.f32.mrb[5].mxu1 }
 0x51b   : > { %1664 = vmatprep.mubr.msk.f32.mxu0 %vm765_vm3, %v948_v34  ;;  %v1711_v34 = vpack.c.bf16 %v1055_v27, %v1051_v26  ;;  %v1093_v26 = vld [vmem:[%s2439_s14 + $0x58] sm:$0xff] }
 0x51c   : > { %1665 = vmatmul.mubr.msk.f32.vlgmr.msra.gmra.mrb[2].mxu0 %vm765_vm3, %v1659_v33 }
 0x51d   : > { %1248 = vmatprep.mubr.f32.mxu0 %v1894_v32  ;;  %1696 = vmatpush1.bf16.msra.mxu0 %v1695_v57  ;;  %v1725_v57 = vpack.c.bf16 %v1099_v56, %v1098_v55 }
 0x51e   : > { %1698 = vmatprep.subr.bf16.mxu0 %v1697_v60  ;;  %v1727_v60 = vpack.c.bf16 %v1083_v59, %v1082_v58 }
 0x51f   : > { %1726 = vmatprep.subr.bf16.mxu1 %v1725_v57 }
 0x520   : > { %1728 = vmatpush3.bf16.msra.mxu1 %v1727_v60 }
 0x521   : > { %1700 = vmatpush1.bf16.msra.mxu0 %v1699_v63  ;;  %v1085_v63 = vld [vmem:[%s2439_s14 + $0x18] sm:$0xff] }
 0x522   : > { %1702 = vmatprep.subr.bf16.mxu0 %v1701_v4  ;;  %v1731_v2 = vpack.c.bf16 %v1085_v63, %v1084_v62  ;;  %v1102_v4 = vld [vmem:[%s2439_s14 + $0xa0] sm:$0xff] }
 0x523   : > { %v1733_v6 = vpack.c.bf16 %v1103_v5, %v1102_v4 }
 0x525   : > { %1704 = vmatpush1.bf16.msra.mxu0 %v1703_v7  ;;  %v1086_v7 = vld [vmem:[%s2439_s14 + $0x20] sm:$0xff] }
 0x526   : > { %1706 = vmatprep.subr.bf16.mxu0 %v1705_v10  ;;  %v1735_v9 = vpack.c.bf16 %v1087_v8, %v1086_v7  ;;  %v1104_v10 = vld [vmem:[%s2439_s14 + $0xb0] sm:$0xff] }
 0x527   : > { %v1737_v12 = vpack.c.bf16 %v1105_v11, %v1104_v10 }
 0x529   : > { %1708 = vmatpush1.bf16.msra.mxu0 %v1707_v13  ;;  %v1088_v13 = vld [vmem:[%s2439_s14 + $0x30] sm:$0xff] }
 0x52a   : > { %1710 = vmatprep.subr.bf16.mxu0 %v1709_v16  ;;  %v1739_v15 = vpack.c.bf16 %v1089_v14, %v1088_v13  ;;  %v1106_v16 = vld [vmem:[%s2439_s14 + $0xc0] sm:$0xff] }
 0x5ef   : > { %v1666_v36 = vpop.f32.mrb[2].mxu0 }
 0x5f0   : > { %v1036_v37 = vpop.f32.mrb[3].mxu0  ;;  %v1042_v38 = vadd.f32 %v1666_v36, %v1541_v35  ;;  %v1713_v36 = vpack.c.bf16 %v1064_v30, %v1060_v29  ;;  %v1111_v29 = vld [vmem:[%s2439_s14 + $0xe8] sm:$0xff] }
 0x5f1   : > { %v1037_v39 = vadd.f32 %v1541_v35, %v1036_v37 }
 0x5f2   : > { %v2145_v41 = vadd.f32 %v1042_v38, %v2036_v0  ;;  %v1059_v38 = vld [vmem:[%s2437_s12 + $0x50] sm:$0xff] }
 0x5f3   : > { %v2142_v40 = vadd.f32 %v1037_v39, %v2047_v3  ;;  %v1063_v39 = vld [vmem:[%s2437_s12 + $0x70] sm:$0xff] }
 0x5f4   : > { %v1118_v43 = vsel %vm522_vm0, %v2145_v41, 0.0 }
 0x5f5   : > { %v1115_v42 = vsel %vm522_vm0, %v2142_v40, 0.0 }
 0x5f6   : > { %1116 = vadd.xlane.f32.xlu1 %v1115_v42  ;;  %v1068_v42 = vld [vmem:[%s2437_s12 + $0x98] sm:$0xff] }
 0x5fa   : > { %1119 = vadd.xlane.f32.xlu1 %v1118_v43  ;;  %v1072_v43 = vld [vmem:[%s2437_s12 + $0xb8] sm:$0xff] }
 0x683   : > { %v1117_v44 = vpop.xlane.xlu1 %1116 }
 0x684   : > { %v1121_v45 = vmul.f32 0.015625, %v1117_v44 }
 0x686   : > { %v1123_v46 = vsub.f32 %v2142_v40, %v1121_v45  ;;  %v1715_v45 = vpack.c.bf16 %v1063_v39, %v1059_v38  ;;  %v1096_v38 = vld [vmem:[%s2439_s14 + $0x70] sm:$0xff]  ;;  %v1097_v39 = vld [vmem:[%s2439_s14 + $0x78] sm:$0xff] }
 0x687   : > { %v1120_v47 = vpop.xlane.xlu1 %1119 }
 0x688   : > { %v1122_v48 = vmul.f32 0.015625, %v1120_v47  ;;  %v1125_v49 = vmul.f32 %v1123_v46, %v1123_v46  ;;  %v1717_v47 = vpack.c.bf16 %v1072_v43, %v1068_v42  ;;  %v1755_v42 = vpack.c.bf16 %v1097_v39, %v1096_v38 }
 0x68a   : > { %v2153_v3 = vsub.f32 %v2145_v41, %v1122_v48  ;;  %v1127_v0 = vsel %vm522_vm0, %v1125_v49, 0.0  ;;  %v1067_v48 = vld [vmem:[%s2437_s12 + $0x90] sm:$0xff] }
 0x68b   : > { %1128 = vadd.xlane.f32.xlu1 %v1127_v0  ;;  %v1071_v49 = vld [vmem:[%s2437_s12 + $0xb0] sm:$0xff]  ;;  %v1080_v0 = vld [vmem:[%s2437_s12 + $0xf8] sm:$0xff] }
 0x68c   : > { %v1126_v50 = vmul.f32 %v2153_v3, %v2153_v3 }
 0x68e   : > { %v1130_v51 = vsel %vm522_vm0, %v1126_v50, 0.0  ;;  %v1719_v50 = vpack.c.bf16 %v1071_v49, %v1067_v48 }
 0x68f   : > { %1131 = vadd.xlane.f32.xlu1 %v1130_v51 }
 0x718   : > { %v1129_v17 = vpop.xlane.xlu1 %1128 }
 0x719   : > { %v1133_v18 = vmul.f32 0.015625, %v1129_v17  ;;  %v1107_v17 = vld [vmem:[%s2439_s14 + $0xc8] sm:$0xff] }
 0x71b   : > { %v1135_v19 = vadd.f32 1e-05, %v1133_v18  ;;  %v1741_v18 = vpack.c.bf16 %v1107_v17, %v1106_v16 }
 0x71c   : > { %v1132_v20 = vpop.xlane.xlu1 %1131 }
 0x71d   : > { %1816 = vrsqrt.f32 %v1135_v19  ;;  %v1134_v21 = vmul.f32 0.015625, %v1132_v20  ;;  %v1090_v19 = vld [vmem:[%s2439_s14 + $0x40] sm:$0xff]  ;;  %v1091_v20 = vld [vmem:[%s2439_s14 + $0x48] sm:$0xff] }
 0x71f   : > { %v1136_v22 = vadd.f32 1e-05, %v1134_v21  ;;  %v1743_v21 = vpack.c.bf16 %v1091_v20, %v1090_v19 }
 0x721   : > { %1818 = vrsqrt.f32 %v1136_v22  ;;  %v1108_v22 = vld [vmem:[%s2439_s14 + $0xd0] sm:$0xff] }
 0x727   : > { %v1817_v23 = vpop.eup %1816 }
 0x728   : > { %v1139_v25 = vmul.f32 %v1817_v23, %v1123_v46  ;;  %v1109_v23 = vld [vmem:[%s2439_s14 + $0xd8] sm:$0xff] }
 0x72a   : > { %v1147_v31 = vmul.f32 %v1544_v24, %v1139_v25  ;;  %v1092_v25 = vld [vmem:[%s2439_s14 + $0x50] sm:$0xff] }
 0x72b   : > { %v1819_v33 = vpop.eup %1818  ;;  %v1747_v27 = vpack.c.bf16 %v1093_v26, %v1092_v25 }
 0x72c   : > { %v1155_v35 = vadd.f32 %v1545_v28, %v1147_v31  ;;  %v1140_v37 = vmul.f32 %v1819_v33, %v2153_v3  ;;  %v1076_v3 = vld [vmem:[%s2437_s12 + $0xd8] sm:$0xff]  ;;  %v1094_v31 = vld [vmem:[%s2439_s14 + $0x60] sm:$0xff]  ;;  %v1095_v33 = vld [vmem:[%s2439_s14 + $0x68] sm:$0xff] }
 0x72d   : > { %v1721_v51 = vpack.c.bf16 %v1080_v0, %v1076_v3  ;;  %v1081_v0 = vld [vmem:[%s2438_s13] sm:$0xf] }
 0x72e   : > { %1546 = vmatmul.mubr.msk.f32.vlgmr.msra.gmra.mrb[4].mxu0 %vm522_vm0, %v1155_v35  ;;  %v1148_v44 = vmul.f32 %v1544_v24, %v1140_v37  ;;  %v1745_v24 = vpack.c.bf16 %v1109_v23, %v1108_v22 }
 0x72f   : > { %1712 = vmatpush1.bf16.msra.mxu0 %v1711_v34  ;;  %1254 = vmatprep.mubr.f32.mxu0 %v1894_v32  ;;  %v1751_v34 = vpack.c.bf16 %v1095_v33, %v1094_v31 }
 0x730   : > { %1714 = vmatprep.subr.bf16.mxu0 %v1713_v36  ;;  %v1156_v46 = vadd.f32 %v1545_v28, %v1148_v44  ;;  %v1110_v28 = vld [vmem:[%s2439_s14 + $0xe0] sm:$0xff]  ;;  %v1113_v36 = vld [vmem:[%s2439_s14 + $0xf8] sm:$0xff] }
 0x731   : > { %v1749_v30 = vpack.c.bf16 %v1111_v29, %v1110_v28 }
 0x732   : > { %1547 = vmatmul.mubr.msk.f32.gmra.mrb[6].mxu0 %vm522_vm0, %v1156_v46 }
 0x733   : > { %1716 = vmatpush1.bf16.msra.mxu0 %v1715_v45  ;;  %1325 = vmatprep.mubr.f32.mxu0 %v1894_v32  ;;  %v1158_v45 = vlaneseq }
 0x734   : > { %1718 = vmatprep.subr.bf16.mxu0 %v1717_v47 }
 0x735   : > { %v1159_v48 = vshrl.u32 %v1158_v45, 7 }
 0x737   : > { %1720 = vmatpush1.bf16.msra.mxu0 %v1719_v50  ;;  %v1168_v49 = vsub.s32 2, %v1159_v48  ;;  %v1172_v3 = vsub.s32 3, %v1159_v48  ;;  %v1160_v63 = vsub.s32 0, %v1159_v48 }
 0x738   : > { %1722 = vmatprep.subr.bf16.mxu0 %v1721_v51 }
 0x739   : > { %v1169_v50 = vrot.slane %v1081_v0, %v1168_v49  ;;  %v1173_v51 = vrot.slane %v1081_v0, %v1172_v3 }
 0x73b   : > { %1724 = vmatpush1.bf16.msra.mxu0 %v1723_v54 }
 0x73e   : > { %1548 = vmatmul.mubr.msk.f32.vlgmr.msra.gmra.mrb[8].mxu0 %vm522_vm0, %v1155_v35  ;;  %v1112_v35 = vld [vmem:[%s2439_s14 + $0xf0] sm:$0xff] }
 0x73f   : > { %1331 = vmatprep.mubr.f32.mxu0 %v1894_v32  ;;  %v1100_v32 = vld [vmem:[%s2439_s14 + $0x90] sm:$0xff]  ;;  %v1753_v37 = vpack.c.bf16 %v1113_v36, %v1112_v35 }
 0x740   : > { %v1729_v1 = vpack.c.bf16 %v1101_v61, %v1100_v32 }
 0x742   : > { %1549 = vmatmul.mubr.msk.f32.gmra.mrb[10].mxu0 %vm522_vm0, %v1156_v46  ;;  %1730 = vmatprep.subr.bf16.mxu1 %v1729_v1  ;;  %v1164_v1 = vsub.s32 1, %v1159_v48 }
 0x743   : > { %1732 = vmatpush3.bf16.msra.mxu1 %v1731_v2  ;;  %v1161_v2 = vrot.slane %v1081_v0, %v1160_v63 }
 0x744   : > { %1734 = vmatprep.subr.bf16.mxu1 %v1733_v6  ;;  %v1165_v5 = vrot.slane %v1081_v0, %v1164_v1 }
 0x747   : > { %1736 = vmatpush3.bf16.msra.mxu1 %v1735_v9 }
 0x748   : > { %1738 = vmatprep.subr.bf16.mxu1 %v1737_v12 }
 0x74b   : > { %1740 = vmatpush3.bf16.msra.mxu1 %v1739_v15 }
 0x74c   : > { %1742 = vmatprep.subr.bf16.mxu1 %v1741_v18 }
 0x74f   : > { %1744 = vmatpush3.bf16.msra.mxu1 %v1743_v21 }
 0x750   : > { %1746 = vmatprep.subr.bf16.mxu1 %v1745_v24 }
 0x753   : > { %1748 = vmatpush3.bf16.msra.mxu1 %v1747_v27 }
 0x754   : > { %1750 = vmatprep.subr.bf16.mxu1 %v1749_v30  ;;  %v1550_v30 = vld [vmem:[%s2440_s15] ss:$0 sm:$0xff] }
 0x757   : > { %1752 = vmatpush3.bf16.msra.mxu1 %v1751_v34 }
 0x758   : > { %1754 = vmatprep.subr.bf16.mxu1 %v1753_v37 }
 0x75b   : > { %1756 = vmatpush3.bf16.msra.mxu1 %v1755_v42 }
 0x801   : > { %v1250_v43 = vpop.f32.mrb[4].mxu0 }
 0x802   : > { %v1252_v44 = vpop.f32.mrb[5].mxu0  ;;  %v1251_v11 = vadd.f32 %v1250_v43, %v1161_v2 }
 0x803   : > { %v1253_v14 = vadd.f32 %v1252_v44, %v1165_v5 }
 0x805   : > { %v1256_v46 = vpop.f32.mrb[6].mxu0 }
 0x806   : > { %v1258_v47 = vpop.f32.mrb[7].mxu0  ;;  %v1257_v23 = vadd.f32 %v1256_v46, %v1161_v2 }
 0x807   : > { %v1259_v25 = vadd.f32 %v1258_v47, %v1165_v5 }
 0x811   : > { %v1327_v52 = vpop.f32.mrb[8].mxu0 }
 0x812   : > { %v1328_v53 = vadd.f32 %v1327_v52, %v1169_v50  ;;  %v1329_v54 = vpop.f32.mrb[9].mxu0 }
 0x813   : > { %v1330_v55 = vadd.f32 %v1329_v54, %v1173_v51 }
 0x814   : > { %v1342_v56 = vmul.f32 0.70710677, %v1328_v53  ;;  %v1338_v7 = vmul.f32 0.5, %v1328_v53 }
 0x815   : > { %v1343_v57 = vmul.f32 0.70710677, %v1330_v55  ;;  %v1333_v58 = vpop.f32.mrb[10].mxu0  ;;  %v1339_v9 = vmul.f32 0.5, %v1330_v55 }
 0x816   : > { %1820 = verf.f32 %v1342_v56  ;;  %v1334_v59 = vadd.f32 %v1333_v58, %v1169_v50  ;;  %v1335_v32 = vpop.f32.mrb[11].mxu0 }
 0x817   : > { %1822 = verf.f32 %v1343_v57  ;;  %v1336_v60 = vadd.f32 %v1335_v32, %v1173_v51 }
 0x818   : > { %v1344_v61 = vmul.f32 0.70710677, %v1334_v59  ;;  %v1340_v18 = vmul.f32 0.5, %v1334_v59 }
 0x819   : > { %v1345_v62 = vmul.f32 0.70710677, %v1336_v60  ;;  %v1341_v20 = vmul.f32 0.5, %v1336_v60 }
 0x81a   : > { %1824 = verf.f32 %v1344_v61 }
 0x81b   : > { %1826 = verf.f32 %v1345_v62 }
 0x820   : > { %v1821_v4 = vpop.eup %1820 }
 0x821   : > { %v1823_v6 = vpop.eup %1822  ;;  %v1350_v8 = vadd.f32 1.0, %v1821_v4 }
 0x822   : > { %v1351_v10 = vadd.f32 1.0, %v1823_v6 }
 0x823   : > { %v1354_v12 = vmul.f32 %v1350_v8, %v1338_v7 }
 0x824   : > { %v1825_v13 = vpop.eup %1824  ;;  %v1355_v15 = vmul.f32 %v1351_v10, %v1339_v9 }
 0x825   : > { %v1827_v16 = vpop.eup %1826  ;;  %v1358_v17 = vmul.f32 %v1354_v12, %v1251_v11  ;;  %v1352_v19 = vadd.f32 1.0, %v1825_v13 }
 0x826   : > { %v1353_v21 = vadd.f32 1.0, %v1827_v16  ;;  %v1359_v22 = vmul.f32 %v1355_v15, %v1253_v14 }
 0x827   : > { %v1356_v24 = vmul.f32 %v1352_v19, %v1340_v18 }
 0x828   : > { %v1357_v26 = vmul.f32 %v1353_v21, %v1341_v20  ;;  %1432 = vmatprep.mubr.f32.mxu1 %v1359_v22 }
 0x829   : > { %1433 = vmatmul.mubr.f32.vlgmr.msra.gmra.mrb[6].mxu1 %v1358_v17  ;;  %v1360_v27 = vmul.f32 %v1356_v24, %v1257_v23 }
 0x82a   : > { %v1361_v28 = vmul.f32 %v1357_v26, %v1259_v25 }
 0x82c   : > { %1437 = vmatprep.mubr.f32.mxu1 %v1361_v28 }
 0x82d   : > { %1438 = vmatmul.mubr.f32.gmra.mrb[8].mxu1 %v1360_v27 }
 0x8fc   : > { %v1614_v29 = vpop.f32.mrb[6].mxu1 }
 0x8fd   : > { %v1615_v31 = vpop.f32.mrb[7].mxu1 }
 0x8fe   : > { %v1616_v33 = vadd.f32 %v1615_v31, %v1614_v29 }
 0x900   : > { %v1435_v34 = vadd.f32 %v1616_v33, %v1550_v30  ;;  %v1617_v35 = vpop.f32.mrb[8].mxu1 }
 0x901   : > { %v1618_v36 = vpop.f32.mrb[9].mxu1 }
 0x902   : > { %v1443_v37 = vadd.f32 %v1435_v34, %v2142_v40  ;;  %v1619_v38 = vadd.f32 %v1618_v36, %v1617_v35 }
 0x904   : > { %1445 = vst.msk [vmem:[%s512_s29] sm:$0xff] %vm522_vm0, %v1443_v37  ;;  %v1440_v39 = vadd.f32 %v1619_v38, %v1550_v30 }
 0x906   : > { %v1444_v42 = vadd.f32 %v1440_v39, %v2145_v41 }
 0x908   : > { %1446 = vst.msk [vmem:[%s512_s29 + $0x8] sm:$0xff] %vm522_vm0, %v1444_v42 }
 0x909   : > { %1841 = shalt.err (!%p1838_p3)
}
 0x90a   : > { %s1842_s18 = scalar_lea.hbm %s2378_s30, 256  ;;  %s1846_s27 = scalar_lea.hbm %s2441_s16, 512 }
 0x90b   : > { %p1843_p4 = scmp.ne.s32.totalorder %s2378_s30, %s1842_s18  ;;  %p1847_p9 = scmp.lt.u32.totalorder %s2378_s30, %s2441_s16 }
 0x90c   : > { %p1848_p10 = scmp.lt.u32.totalorder %s1846_s27, %s1842_s18  ;;  %p1850_p12 = scmp.lt.u32.totalorder %s1842_s18, %s2378_s30 }
 0x90d   : > { %p1844_p7 = pnand %p1843_p4, %p2022_p5 }
 0x90e   : > { %p1849_p11 = por %p1848_p10, %p1847_p9 }
 0x90f   : > { %p1845_p8 = pneg %p1844_p7 }
 0x910   : > { %p1851_p13 = por %p1850_p12, %p1849_p11 }
 0x912   : > { %p1852_p0 = pnand %p1851_p13, %p1845_p8 }
 0x914   : > { %1855 = shalt.err (!%p1852_p0)
}
 0x915   : > { %s1897_s17 = smov 128   ;;  %s1898_s1 = smov 8  }
 0x916   : > { %1757 = dma.vmem_to_hbm [thread:$0]  (%p2022_p5), %s2380_s23, 256, %s2378_s30, %s2384_s25, %s1897_s17, %s1897_s17, %s1898_s1  }
 0x917 PF: > { %p1763_p1 = scmp.ge.s32.totalorder %s1890_s24, 2  ;;  %s1476_s28 = sand.u32 1, %s1878_s21  }
 0x918   : > { %s1477_s18 = scalar_lea.sflag [#allocation3], %s1476_s28 }
 0x919   : > { %p1760_p2 = pnand %p1763_p1, %p2026_p6 }
 0x91b   : > { %1873 = dma.done.wait (!%p1760_p2), %s1477_s18, 256  }
 0x91c   : > { %1875 = vsyncadd (!%p1760_p2), %s1477_s18, 4294967040  ;;  %s2460_s24 = sld [smem:[#allocation6_spill]]  ;;  %s2461_s29 = sld [smem:[#allocation5_spill]] }
 0x91d   : > { %s2462_s23 = sld [smem:[#allocation7_spill]]  ;;  %s2463_s21 = smov %s1882_s22 }
 0x922   : > { %p26_p3 = scmp.ge.s32.totalorder %s2460_s24, 4   ;;  %s2464_s22 = smov %s2461_s29 }
 0x924   :  { %28 = sbr.rel (!%p26_p3) target bundleno = 7 (0x7), region = 119 }
 0x92b   :  { %1482 = vsyncpa [#allocation3], 1 }
 0x92c   :  { %1484 = vsyncpa [#allocation3 + $0x1], 1 }

</bundles_post_ra>
